<compile_context>
chip_gen: v7x
topology: tpu7x:2x2x1
jax: 0.10.0
libtpu: 0.0.40
codegen_flags: <defaults>
</compile_context>

<pallas_src>
import functools

import jax
import jax.numpy as jnp
from jax.experimental import pallas as pl
from jax.experimental.pallas import tpu as pltpu


def _ls_ce_kernel(x_ref, t_ref, out_ref, *, confidence, smoothing):
    # x_ref: (tn, C) logits tile, t_ref: (tn, 1) int32 targets,
    # out_ref: (1, tn) f32 lane-dense per-sample losses.
    x = x_ref[...].astype(jnp.float32)                       # (tn, C)

    # log-sum-exp per row (only thing that needs the exp pass).
    m = jnp.max(x, axis=-1, keepdims=True)                   # (tn, 1)
    lse = m + jnp.log(jnp.sum(jnp.exp(x - m), axis=-1, keepdims=True))

    # Gather x[row, target[row]] via a one-hot masked row-sum (no logprobs
    # materialization needed: logprobs = x - lse).
    tgt = t_ref[...]                                          # (tn, 1) int32
    col = jax.lax.broadcasted_iota(jnp.int32, x.shape, 1)     # (tn, C)
    x_tgt = jnp.sum(jnp.where(col == tgt, x, 0.0), axis=-1, keepdims=True)
    x_mean = jnp.mean(x, axis=-1, keepdims=True)              # (tn, 1)

    # confidence*(lse - x_tgt) + smoothing*(lse - x_mean)
    #   == lse - confidence*x_tgt - smoothing*x_mean   (confidence+smoothing=1)
    loss = lse - confidence * x_tgt - smoothing * x_mean      # (tn, 1)

    # Lane-dense writeback: (tn, 1) column -> (1, tn) row (XLU relayout).
    out_ref[...] = loss.reshape(1, -1).astype(out_ref.dtype)


def _pick_block_rows(C):
    """Row-tile size: biggest double-buffered f32 logits tile <= ~28 MiB."""
    budget = 28 * 1024 * 1024
    tn = budget // (C * 8)                 # 2 buffers x 4 B/elem (f32 working)
    tn = max(128, (tn // 128) * 128)       # lane-dense output wants tn % 128 == 0
    return min(tn, 4096)


def label_smoothing_cross_entropy(x, target, *, smoothing=0.1,
                                  reduction='mean', block_rows=None):
    """JAX/Pallas equivalent of LabelSmoothingCrossEntropy(smoothing, reduction)(x, target)."""
    assert smoothing < 1.0
    confidence = 1.0 - smoothing
    N, C = x.shape

    tn = _pick_block_rows(C) if block_rows is None else int(block_rows)
    if tn >= N:
        # Single grid step: block equals the (lightly padded) full extent.
        tn = ((N + 7) // 8) * 8
    n_pad = ((N + tn - 1) // tn) * tn
    grid = n_pad // tn

    t2 = target.astype(jnp.int32).reshape(N, 1)
    if n_pad != N:
        x = jnp.pad(x, ((0, n_pad - N), (0, 0)))
        t2 = jnp.pad(t2, ((0, n_pad - N), (0, 0)))

    kernel = functools.partial(
        _ls_ce_kernel, confidence=confidence, smoothing=smoothing)

    loss_row = pl.pallas_call(
        kernel,
        out_shape=jax.ShapeDtypeStruct((1, n_pad), jnp.float32),
        grid=(grid,),
        in_specs=[
            pl.BlockSpec((tn, C), lambda i: (i, 0)),   # logits tile (pipelined)
            pl.BlockSpec((tn, 1), lambda i: (i, 0)),   # targets tile (tiny)
        ],
        out_specs=pl.BlockSpec((1, tn), lambda i: (0, i)),   # lane-dense losses
        compiler_params=pltpu.CompilerParams(
            dimension_semantics=("parallel",),          # megacore on v7x
            vmem_limit_bytes=48 * 1024 * 1024,          # > 16/32 MiB defaults
        ),
    )(x, t2)

    loss = loss_row[0, :N]                              # (N,) f32 per-sample
    if reduction == 'none':
        return loss
    # TODO(synk): the PyTorch module computes loss.mean() but never returns it
    # (missing `return`); mirror that behavior exactly and return None.
    return None


def _reference(x, target, smoothing=0.1):
    logprobs = jax.nn.log_softmax(x.astype(jnp.float32), axis=-1)
    nll = -jnp.take_along_axis(
        logprobs, target[:, None].astype(jnp.int32), axis=-1)[:, 0]
    smooth = -jnp.mean(logprobs, axis=-1)
    return (1.0 - smoothing) * nll + smoothing * smooth


if __name__ == "__main__":
    key = jax.random.PRNGKey(0)
    kx, kt, kx2, kt2 = jax.random.split(key, 4)

    # Small primary test: batch=8, classes=32 (single-block path).
    N, C = 8, 32
    x = jax.random.normal(kx, (N, C), dtype=jnp.float32)
    target = jax.random.randint(kt, (N,), 0, C, dtype=jnp.int32)

    loss = label_smoothing_cross_entropy(x, target, smoothing=0.1,
                                         reduction='none')
    loss = jax.block_until_ready(loss)
    ref = _reference(x, target, smoothing=0.1)
    assert loss.shape == (N,)
    assert jnp.allclose(loss, ref, atol=1e-5, rtol=1e-5), (loss, ref)

    # Exercise the tiled path: non-divisible N, forced block_rows=128
    # (padding + multi-step grid + lane-dense output blocks).
    N2, C2 = 300, 160
    x2 = jax.random.normal(kx2, (N2, C2), dtype=jnp.float32)
    target2 = jax.random.randint(kt2, (N2,), 0, C2, dtype=jnp.int32)

    loss2 = label_smoothing_cross_entropy(x2, target2, smoothing=0.1,
                                          reduction='none', block_rows=128)
    loss2 = jax.block_until_ready(loss2)
    ref2 = _reference(x2, target2, smoothing=0.1)
    assert loss2.shape == (N2,)
    assert jnp.allclose(loss2, ref2, atol=1e-5, rtol=1e-5), (loss2, ref2)

    print("KERNEL_OK")
</pallas_src>

<mosaic_0001>
module attributes {stable_mosaic.version = 11 : i64} {
  func.func @_ls_ce_kernel(%arg0: i32, %arg1: memref<8x32xf32, #tpu.memory_space<vmem>>, %arg2: memref<8x1xi32, #tpu.memory_space<vmem>>, %arg3: memref<1x8xf32, #tpu.memory_space<vmem>>) attributes {dimension_semantics = [#tpu.dimension_semantics<parallel>], iteration_bounds = array<i64: 1>, scalar_prefetch = 0 : i64, scratch_operands = 0 : i64, tpu.core_type = #tpu.core_type<tc>, window_params = [{transform_indices = @transform_0, window_bounds = array<i64: 8, 32>}, {transform_indices = @transform_1, window_bounds = array<i64: 8, 1>}, {transform_indices = @transform_2, window_bounds = array<i64: 1, 8>}]} {
    %c0 = arith.constant 0 : index
    %c0_0 = arith.constant 0 : index
    %0 = vector.load %arg1[%c0, %c0_0] : memref<8x32xf32, #tpu.memory_space<vmem>>, vector<8x32xf32>
    %cst = arith.constant dense<0xFF800000> : vector<8xf32>
    %1 = vector.multi_reduction <maximumf>, %0, %cst [1] : vector<8x32xf32> to vector<8xf32>
    %2 = vector.shape_cast %1 : vector<8xf32> to vector<8x1xf32>
    %3 = vector.broadcast %2 : vector<8x1xf32> to vector<8x32xf32>
    %4 = arith.subf %0, %3 : vector<8x32xf32>
    %5 = math.exp %4 : vector<8x32xf32>
    %cst_1 = arith.constant dense<0.000000e+00> : vector<8xf32>
    %6 = vector.multi_reduction <add>, %5, %cst_1 [1] : vector<8x32xf32> to vector<8xf32>
    %7 = vector.shape_cast %6 : vector<8xf32> to vector<8x1xf32>
    %8 = math.log %7 : vector<8x1xf32>
    %9 = arith.addf %2, %8 : vector<8x1xf32>
    %c0_2 = arith.constant 0 : index
    %c0_3 = arith.constant 0 : index
    %10 = vector.load %arg2[%c0_2, %c0_3] : memref<8x1xi32, #tpu.memory_space<vmem>>, vector<8x1xi32>
    %11 = tpu.iota {dimensions = array<i32: 1>} : vector<8x32xi32>
    %12 = vector.broadcast %10 : vector<8x1xi32> to vector<8x32xi32>
    %13 = arith.cmpi eq, %11, %12 : vector<8x32xi32>
    %cst_4 = arith.constant 0.000000e+00 : f32
    %14 = vector.broadcast %cst_4 : f32 to vector<8x32xf32>
    %15 = arith.select %13, %0, %14 : vector<8x32xi1>, vector<8x32xf32>
    %cst_5 = arith.constant dense<0.000000e+00> : vector<8xf32>
    %16 = vector.multi_reduction <add>, %15, %cst_5 [1] : vector<8x32xf32> to vector<8xf32>
    %17 = vector.shape_cast %16 : vector<8xf32> to vector<8x1xf32>
    %cst_6 = arith.constant dense<0.000000e+00> : vector<8xf32>
    %18 = vector.multi_reduction <add>, %0, %cst_6 [1] : vector<8x32xf32> to vector<8xf32>
    %19 = vector.shape_cast %18 : vector<8xf32> to vector<8x1xf32>
    %cst_7 = arith.constant 3.200000e+01 : f32
    %20 = vector.broadcast %cst_7 : f32 to vector<8x1xf32>
    %21 = arith.divf %19, %20 : vector<8x1xf32>
    %cst_8 = arith.constant 0.899999976 : f32
    %22 = vector.broadcast %cst_8 : f32 to vector<8x1xf32>
    %23 = arith.mulf %22, %17 : vector<8x1xf32>
    %24 = arith.subf %9, %23 : vector<8x1xf32>
    %cst_9 = arith.constant 1.000000e-01 : f32
    %25 = vector.broadcast %cst_9 : f32 to vector<8x1xf32>
    %26 = arith.mulf %25, %21 : vector<8x1xf32>
    %27 = arith.subf %24, %26 : vector<8x1xf32>
    %28 = vector.shape_cast %27 : vector<8x1xf32> to vector<1x8xf32>
    %c0_10 = arith.constant 0 : index
    %c0_11 = arith.constant 0 : index
    %29 = vector.load %arg3[%c0_10, %c0_11] : memref<1x8xf32, #tpu.memory_space<vmem>>, vector<1x8xf32>
    tpu.vector_store %arg3[%c0_10, %c0_11], %28 {strides = array<i32>} : memref<1x8xf32, #tpu.memory_space<vmem>>, vector<1x8xf32>,
    return
  }
  func.func @transform_0(%arg0: i32) -> (i32, i32) {
    %c0_i32 = arith.constant 0 : i32
    %c0_i32_0 = arith.constant 0 : i32
    return %arg0, %c0_i32 : i32, i32
  }
  func.func @transform_1(%arg0: i32) -> (i32, i32) {
    %c0_i32 = arith.constant 0 : i32
    %c0_i32_0 = arith.constant 0 : i32
    return %arg0, %c0_i32 : i32, i32
  }
  func.func @transform_2(%arg0: i32) -> (i32, i32) {
    %c0_i32 = arith.constant 0 : i32
    %c0_i32_0 = arith.constant 0 : i32
    return %c0_i32, %arg0 : i32, i32
  }
}

</mosaic_0001>

<bundles_post_ra>
// kernel: tpu_custom_call.1
= control target key start
LH: loop header
LB: loop body
LE: loop exit
PB: predicated region body
PF: predicated region fallthrough
CT: control target
= control target key end

     0   :  { %vm13_vm0 = vcmask 261120   ;;  %s138_s0 = inlined_call_operand.vmem [shape: f32[8,32], index: 0, kind: input, shape index: {}]   ;;  %s139_s1 = inlined_call_operand.vmem [shape: s32[8,1], index: 1, kind: input, shape index: {}]   ;;  %s140_s2 = inlined_call_operand.hbm [shape: f32[1,8], index: 2, kind: output, shape index: {}]  }
   0x1   :  { %v12_v0 = vld [vmem:[%s138_s0] sm:$0xff] }
   0x2   :  { %7 = vsyncpa [#allocation3], 0  ;;  %v14_v1 = vsel %vm13_vm0, %v12_v0, -inf  ;;  %v99_v2 = vmov 0   ;;  %v26_v3 = vld [vmem:[%s139_s1] sm:$0xff]  ;;  %v27_v7 = vlaneseq  ;;  %v37_v14 = vsel %vm13_vm0, %v12_v0, 0.0 }
   0x3   :  { %70 = vset.pattern.permute.xlu0 %v99_v2  ;;  %s100_s0 = smov [#allocation2]   ;;  %vm52_vm2 = vcmask 57344  }
   0x4   :  { %15 = vmax.xlane.f32.xlu0 %v14_v1  ;;  %v28_v8 = vand.u32 127, %v27_v7  ;;  %v48_v20 = vshrl.u32 %v27_v7, 7  ;;  %s60_s1 = sshll.u32 %s100_s0, 4  ;;  %s61_s1 = int_to_ptr.vmem [resolvable:$true] %s60_s1 }
   0x5   :  { %s75_s13 = scalar_lea.vmem %s61_s1, 16  ;;  %s79_s14 = scalar_lea.vmem %s61_s1, 32 }
   0x6   :  { %v49_v25 = vsub.s32 %v28_v8, %v48_v20  ;;  %p76_p0 = scmp.ne.s32.totalorder %s61_s1, %s75_s13  ;;  %p80_p1 = scmp.lt.s32.totalorder %s61_s1, %s61_s1 }
   0x7   :  { %p81_p2 = scmp.lt.s32.totalorder %s79_s14, %s75_s13 }
   0x9   :  { %p82_p3 = por %p81_p2, %p80_p1 }
   0xb   :  { %p83_p4 = pnand %p82_p3, %p76_p0 }
  0x1a   :  { %30 = vperm.xlu0 %70, %v26_v3  }
  0x91   :  { %v16_v4 = vpop.xlane.xlu0 %15 }
  0x92   :  { %v17_v5 = vsub.f32 %v12_v0, %v16_v4 }
  0x94   :  { %v18_v6 = vmul.f32 1.442695, %v17_v5 }
  0x96   :  { %71 = vpow2.f32 %v18_v6 }
  0x99   :  { %v31_v9 = vpop.permute.xlu0 %30 }
  0x9a   :  { %vm32_vm1 = vcmp.eq.s32.totalorder %v28_v8, %v31_v9 }
  0x9b   :  { %v33_v11 = vsel %vm32_vm1, %v12_v0, 0.0 }
  0x9c   :  { %v34_v13 = vsel %vm13_vm0, %v33_v11, 0.0 }
  0xa0   :  { %v72_v10 = vpop.eup %71 }
  0xa1   :  { %v20_v12 = vsel %vm13_vm0, %v72_v10, 0.0 }
  0xa2   :  { %21 = vadd.xlane.f32.xlu1 %v20_v12 }
  0xa6   :  { %35 = vadd.xlane.f32.xlu1 %v34_v13 }
  0xaa   :  { %38 = vadd.xlane.f32.xlu1 %v37_v14 }
 0x12f   :  { %v22_v15 = vpop.xlane.xlu1 %21 }
 0x130   :  { %73 = vlog2.f32 %v22_v15 }
 0x133   :  { %v36_v16 = vpop.xlane.xlu1 %35 }
 0x134   :  { %v42_v23 = vmul.f32 0.9, %v36_v16 }
 0x137   :  { %v39_v17 = vpop.xlane.xlu1 %38 }
 0x138   :  { %v41_v18 = vmul.f32 0.03125, %v39_v17 }
 0x13a   :  { %v74_v19 = vpop.eup %73  ;;  %v44_v24 = vmul.f32 0.1, %v41_v18 }
 0x13b   :  { %v24_v21 = vmul.f32 0.6931472, %v74_v19 }
 0x13d   :  { %v25_v22 = vadd.f32 %v24_v21, %v16_v4 }
 0x13f   :  { %v43_v26 = vsub.f32 %v25_v22, %v42_v23 }
 0x141   :  { %v45_v27 = vsub.f32 %v43_v26, %v44_v24 }
 0x143   :  { %v50_v28 = vrot.slane %v45_v27, %v49_v25 }
 0x145   :  { %53 = vst.msk [vmem:[#allocation2] sm:$0x1] %vm52_vm2, %v50_v28 }
 0x146   :  { %86 = shalt.err (!%p83_p4)
}
 0x147   :  { %s87_s17 = scalar_lea.hbm %s140_s2, 16 }
 0x148   :  { %p88_p5 = scmp.ne.s32.totalorder %s140_s2, %s87_s17  ;;  %p91_p6 = scmp.lt.u32.totalorder %s87_s17, %s140_s2 }
 0x14a   :  { %p93_p7 = pnand %p91_p6, %p88_p5 }
 0x14c   :  { %96 = shalt.err (!%p93_p7)
}
 0x14d   :  { %63 = dma.vmem_to_hbm [thread:$0]  %s61_s1, 16, %s140_s2, [#allocation3]  }
 0x14e   :  { %97 = dma.done.wait [#allocation3], 16  }
 0x14f   :  { %98 = vsyncadd [#allocation3], 4294967280 }
 0x150   :  { %67 = vsyncpa [#allocation3], 1 }

</bundles_post_ra>
